<compile_context>
chip_gen: v5e
topology: v5e:2x2
jax: 0.10.0
libtpu: 0.0.40
codegen_flags: <defaults>
</compile_context>

<pallas_src>
import functools

import jax
import jax.numpy as jnp
from jax.experimental import pallas as pl
from jax.experimental.pallas import tpu as pltpu

LN_EPS = 1e-5                      # PyTorch nn.LayerNorm default
_MIB = 1024 * 1024
_TARGET_STREAM_BYTES = 4 * _MIB    # streamed bytes per grid step (amortize ~0.35us)


def _round_up(v, m):
    return (v + m - 1) // m * m


@functools.lru_cache(maxsize=1)
def _vmem_limit_bytes():
    """Generation-aware scoped-VMEM target (enforced via vmem_limit_bytes)."""
    try:
        cap = pltpu.get_tpu_info().vmem_capacity_bytes
    except Exception:
        cap = 64 * _MIB            # conservative (v7x-sized) fallback
    # ~75% of physical: ~96 MiB on v5e/v6e (128 MiB), ~48 MiB on v7x (64 MiB).
    return int(min(cap * 3 // 4, 100 * _MIB))


def _prenorm_kernel(x_ref, ln_ref, bias_ref, wt_ref, o_ref, *, inv_d, pad_frac):
    """One (row-tile, N-tile) step of Linear(LayerNorm(x)) = LN(x) @ W^T + b.

    x_ref:    (TM, Dp)  input rows (feature dim zero-padded to Dp if needed)
    ln_ref:   (2,  Dp)  stacked [gamma; beta] f32, grid-invariant
    bias_ref: (1,  TN)  Linear bias slice, f32
    wt_ref:   (Dp, TN)  W^T slice
    o_ref:    (TM, TN)  output tile
    """
    x = x_ref[...].astype(jnp.float32)                    # (TM, Dp)
    gamma = ln_ref[0:1, :]
    beta = ln_ref[1:2, :]

    # LayerNorm over the true feature width D (biased variance, PyTorch-style).
    # Padded lanes of x are zero, so sum(x) is already the true sum.  Each pad
    # lane contributes mean**2 to sum(xc^2); that is removed exactly by the
    # static pad_frac correction -> no per-step iota/compare/select mask.
    mean = jnp.sum(x, axis=-1, keepdims=True) * inv_d      # (TM, 1)
    xc = x - mean
    var = jnp.sum(xc * xc, axis=-1, keepdims=True) * inv_d
    if pad_frac:                                           # static (0 when no pad)
        var = var - jnp.float32(pad_frac) * (mean * mean)
    inv = jax.lax.rsqrt(var + LN_EPS)
    y = xc * inv * gamma + beta        # pad lanes: gamma = beta = 0 -> y = 0

    # fn = Linear: y @ W^T + b.  Cast y to the weight dtype (bf16 weights use
    # the fast MXU path); accumulate in f32.
    out = jnp.dot(y.astype(wt_ref.dtype), wt_ref[...],
                  preferred_element_type=jnp.float32)
    o_ref[...] = (out + bias_ref[...]).astype(o_ref.dtype)


@functools.partial(jax.jit, static_argnames=("matmul_dtype",))
def prenorm_linear(x, gamma, beta, w, b, *, matmul_dtype=None):
    """x: (B, N, D). gamma/beta: (D,). w: (D, D) PyTorch-style (out, in). b: (D,).

    matmul_dtype: optional opt-in (e.g. jnp.bfloat16) to run the matmul on the
    fast MXU path while LayerNorm statistics stay f32.
    """
    B, N, D = x.shape
    rows = B * N

    x_is = jnp.dtype(x.dtype).itemsize
    o_is = x_is
    min_tm = max(8, 32 // x_is)        # native sublane tile: f32->8, bf16->16, int8->32

    mm_dtype = jnp.dtype(matmul_dtype) if matmul_dtype is not None else jnp.dtype(w.dtype)
    w_is = mm_dtype.itemsize

    pad_d = (D % 128) != 0
    Dp = _round_up(D, 128) if pad_d else D

    # ---- operand prep (zero extra HBM round trips when D % 128 == 0) ----
    x2 = x.reshape(rows, D)                                   # layout-preserving
    wt = w.T.astype(mm_dtype)                                 # (D, D)
    ln = jnp.stack([gamma.astype(jnp.float32), beta.astype(jnp.float32)])  # (2, D)
    b2 = b.astype(jnp.float32).reshape(1, D)
    if pad_d:
        x2 = jnp.zeros((rows, Dp), x.dtype).at[:, :D].set(x2)
        wt = jnp.zeros((Dp, Dp), mm_dtype).at[:D, :D].set(wt)
        ln = jnp.zeros((2, Dp), jnp.float32).at[:, :D].set(ln)
        b2 = jnp.zeros((1, Dp), jnp.float32).at[:, :D].set(b2)

    # ---- generation-aware VMEM budget, enforced below via vmem_limit_bytes ----
    vmem_limit = _vmem_limit_bytes()
    budget = vmem_limit - 2 * _MIB     # headroom for Mosaic internal scratch

    # ---- weight N tiling: bound the resident W^T tile (critical on v7x) ----
    wt_full = Dp * Dp * w_is
    w_budget = budget // 3
    if wt_full <= w_budget:
        tn, wt_vmem = Dp, wt_full                      # resident, single-buffered
    else:
        tn = max(128, (w_budget // (2 * Dp * w_is)) // 128 * 128)
        tn = min(tn, Dp)
        wt_vmem = 2 * Dp * tn * w_is                   # double-buffered weight tiles
    num_n = pl.cdiv(Dp, tn)

    # ---- row tile: >= ~4 MiB streamed per step, 256-aligned for v6e/v7x MXU ----
    tm = _TARGET_STREAM_BYTES // max(1, Dp * (x_is + o_is))
    tm = min(2048, max(256, _round_up(tm, 256)))
    # Per-row VMEM: double-buffered x/out tiles + f32 temporaries in the kernel.
    per_row = 2 * Dp * x_is + 2 * tn * o_is + 4 * Dp * 4 + tn * 4
    avail = max(0, budget - wt_vmem - 8 * Dp * 4)
    max_tm = avail // per_row
    if max_tm >= 256:
        max_tm = max_tm // 256 * 256
    else:
        max_tm = max_tm // min_tm * min_tm
    max_tm = max(min_tm, max_tm)
    tm = min(tm, max_tm, _round_up(rows, min_tm))
    # Megacore (v7x has 2 TensorCores): give the parallel row axis >= 2 steps.
    if rows >= 2 * min_tm and pl.cdiv(rows, tm) < 2:
        tm = max(min_tm, _round_up((rows + 1) // 2, min_tm))
    num_m = pl.cdiv(rows, tm)          # partial last block: edge store is masked

    grid = (num_m, num_n)

    buf1 = pl.Buffered(1)
    ln_spec = pl.BlockSpec((2, Dp), lambda i, j: (0, 0), pipeline_mode=buf1)
    if num_n == 1:
        bias_spec = pl.BlockSpec((1, tn), lambda i, j: (0, j), pipeline_mode=buf1)
        wt_spec = pl.BlockSpec((Dp, tn), lambda i, j: (0, j), pipeline_mode=buf1)
    else:
        bias_spec = pl.BlockSpec((1, tn), lambda i, j: (0, j))
        wt_spec = pl.BlockSpec((Dp, tn), lambda i, j: (0, j))

    flops = 2 * rows * Dp * Dp + 8 * rows * Dp
    bytes_accessed = (rows * Dp * (x_is + o_is)
                      + Dp * Dp * w_is * (1 if num_n == 1 else num_m)
                      + 3 * Dp * 4)

    kernel = functools.partial(_prenorm_kernel,
                               inv_d=1.0 / D,
                               pad_frac=float(Dp - D) / D)

    out2 = pl.pallas_call(
        kernel,
        out_shape=jax.ShapeDtypeStruct((rows, Dp), x.dtype),
        grid_spec=pltpu.PrefetchScalarGridSpec(
            num_scalar_prefetch=0,
            grid=grid,
            in_specs=[
                pl.BlockSpec((tm, Dp), lambda i, j: (i, 0)),   # streamed row tiles
                ln_spec,                                        # gamma/beta (invariant)
                bias_spec,                                      # bias slice
                wt_spec,                                        # W^T slice
            ],
            out_specs=pl.BlockSpec((tm, tn), lambda i, j: (i, j)),
        ),
        compiler_params=pltpu.CompilerParams(
            dimension_semantics=("parallel", "arbitrary"),
            vmem_limit_bytes=vmem_limit),
        cost_estimate=pl.CostEstimate(
            flops=int(flops),
            transcendentals=int(rows * num_n),
            bytes_accessed=int(bytes_accessed)),
    )(x2, ln, b2, wt)

    if pad_d:
        out2 = out2[:, :D]
    return out2.reshape(B, N, D)


def prenorm_reference(x, gamma, beta, w, b):
    """Pure-JAX reference of fn(LayerNorm(x)) with fn = Linear."""
    xf = x.astype(jnp.float32)
    mean = jnp.mean(xf, axis=-1, keepdims=True)
    var = jnp.mean((xf - mean) ** 2, axis=-1, keepdims=True)
    y = (xf - mean) * jax.lax.rsqrt(var + LN_EPS) * gamma + beta
    return (y @ w.T.astype(jnp.float32) + b).astype(x.dtype)


if __name__ == "__main__":
    def run_case(B, N, D, key):
        kx, kw, kb, kg, kbt = jax.random.split(key, 5)
        x = jax.random.normal(kx, (B, N, D), dtype=jnp.float32)
        gamma = 1.0 + 0.1 * jax.random.normal(kg, (D,), dtype=jnp.float32)
        beta = 0.05 * jax.random.normal(kbt, (D,), dtype=jnp.float32)
        w = jax.random.normal(kw, (D, D), dtype=jnp.float32) * 0.05
        b = jax.random.normal(kb, (D,), dtype=jnp.float32) * 0.01

        out = jax.block_until_ready(prenorm_linear(x, gamma, beta, w, b))
        ref = prenorm_reference(x, gamma, beta, w, b)
        assert out.shape == (B, N, D)
        assert jnp.allclose(out, ref, atol=2e-5, rtol=2e-5), f"mismatch vs reference (D={D})"

    key = jax.random.PRNGKey(0)
    k1, k2 = jax.random.split(key)
    run_case(2, 8, 32, k1)      # D % 128 != 0 -> padded-feature path
    run_case(2, 13, 128, k2)    # D % 128 == 0 -> zero-copy path, masked edge row block
    print("KERNEL_OK")
</pallas_src>

<mosaic_0001>
module attributes {stable_mosaic.version = 11 : i64} {
  func.func @_prenorm_kernel(%arg0: i32, %arg1: i32, %arg2: memref<8x128xf32, #tpu.memory_space<vmem>>, %arg3: memref<2x128xf32, #tpu.memory_space<vmem>>, %arg4: memref<1x128xf32, #tpu.memory_space<vmem>>, %arg5: memref<128x128xf32, #tpu.memory_space<vmem>>, %arg6: memref<8x128xf32, #tpu.memory_space<vmem>>) attributes {dimension_semantics = [#tpu.dimension_semantics<parallel>, #tpu.dimension_semantics<arbitrary>], iteration_bounds = array<i64: 2, 1>, scalar_prefetch = 0 : i64, scratch_operands = 0 : i64, tpu.core_type = #tpu.core_type<tc>, window_params = [{transform_indices = @transform_0, window_bounds = array<i64: 8, 128>}, {pipeline_mode = #tpu.pipeline_mode<synchronous>, transform_indices = @transform_1, window_bounds = array<i64: 2, 128>}, {pipeline_mode = #tpu.pipeline_mode<synchronous>, transform_indices = @transform_2, window_bounds = array<i64: 1, 128>}, {pipeline_mode = #tpu.pipeline_mode<synchronous>, transform_indices = @transform_3, window_bounds = array<i64: 128, 128>}, {transform_indices = @transform_4, window_bounds = array<i64: 8, 128>}]} {
    %c0 = arith.constant 0 : index
    %c0_0 = arith.constant 0 : index
    %0 = vector.load %arg2[%c0, %c0_0] : memref<8x128xf32, #tpu.memory_space<vmem>>, vector<8x128xf32>
    %c0_1 = arith.constant 0 : index
    %c0_2 = arith.constant 0 : index
    %1 = vector.load %arg3[%c0_1, %c0_2] : memref<2x128xf32, #tpu.memory_space<vmem>>, vector<1x128xf32>
    %c1 = arith.constant 1 : index
    %c0_3 = arith.constant 0 : index
    %2 = vector.load %arg3[%c1, %c0_3] : memref<2x128xf32, #tpu.memory_space<vmem>>, vector<1x128xf32>
    %cst = arith.constant dense<0.000000e+00> : vector<8xf32>
    %3 = vector.multi_reduction <add>, %0, %cst [1] : vector<8x128xf32> to vector<8xf32>
    %4 = vector.shape_cast %3 : vector<8xf32> to vector<8x1xf32>
    %cst_4 = arith.constant 3.125000e-02 : f32
    %5 = vector.broadcast %cst_4 : f32 to vector<8x1xf32>
    %6 = arith.mulf %4, %5 : vector<8x1xf32>
    %7 = vector.broadcast %6 : vector<8x1xf32> to vector<8x128xf32>
    %8 = arith.subf %0, %7 : vector<8x128xf32>
    %9 = arith.mulf %8, %8 : vector<8x128xf32>
    %cst_5 = arith.constant dense<0.000000e+00> : vector<8xf32>
    %10 = vector.multi_reduction <add>, %9, %cst_5 [1] : vector<8x128xf32> to vector<8xf32>
    %11 = vector.shape_cast %10 : vector<8xf32> to vector<8x1xf32>
    %cst_6 = arith.constant 3.125000e-02 : f32
    %12 = vector.broadcast %cst_6 : f32 to vector<8x1xf32>
    %13 = arith.mulf %11, %12 : vector<8x1xf32>
    %14 = arith.mulf %6, %6 : vector<8x1xf32>
    %cst_7 = arith.constant 3.000000e+00 : f32
    %15 = vector.broadcast %cst_7 : f32 to vector<8x1xf32>
    %16 = arith.mulf %15, %14 : vector<8x1xf32>
    %17 = arith.subf %13, %16 : vector<8x1xf32>
    %cst_8 = arith.constant 9.99999974E-6 : f32
    %18 = vector.broadcast %cst_8 : f32 to vector<8x1xf32>
    %19 = arith.addf %17, %18 : vector<8x1xf32>
    %20 = math.rsqrt %19 : vector<8x1xf32>
    %21 = vector.broadcast %20 : vector<8x1xf32> to vector<8x128xf32>
    %22 = arith.mulf %8, %21 : vector<8x128xf32>
    %23 = vector.broadcast %1 : vector<1x128xf32> to vector<8x128xf32>
    %24 = arith.mulf %22, %23 : vector<8x128xf32>
    %25 = vector.broadcast %2 : vector<1x128xf32> to vector<8x128xf32>
    %26 = arith.addf %24, %25 : vector<8x128xf32>
    %c0_9 = arith.constant 0 : index
    %c0_10 = arith.constant 0 : index
    %27 = vector.load %arg5[%c0_9, %c0_10] : memref<128x128xf32, #tpu.memory_space<vmem>>, vector<128x128xf32>
    %cst_11 = arith.constant dense<0.000000e+00> : vector<8x128xf32>
    %28 = tpu.matmul %26, %27, %cst_11 {dimension_numbers = #tpu.dot_dimension_numbers<[1], [0], [0], [1], [0, 0, 1, 1], [], []>} : vector<8x128xf32>, vector<128x128xf32>, vector<8x128xf32> -> vector<8x128xf32>
    %c0_12 = arith.constant 0 : index
    %c0_13 = arith.constant 0 : index
    %29 = vector.load %arg4[%c0_12, %c0_13] : memref<1x128xf32, #tpu.memory_space<vmem>>, vector<1x128xf32>
    %30 = vector.broadcast %29 : vector<1x128xf32> to vector<8x128xf32>
    %31 = arith.addf %28, %30 : vector<8x128xf32>
    %c0_14 = arith.constant 0 : index
    %c0_15 = arith.constant 0 : index
    %32 = vector.load %arg6[%c0_14, %c0_15] : memref<8x128xf32, #tpu.memory_space<vmem>>, vector<8x128xf32>
    tpu.vector_store %arg6[%c0_14, %c0_15], %31 {strides = array<i32>} : memref<8x128xf32, #tpu.memory_space<vmem>>, vector<8x128xf32>,
    return
  }
  func.func @transform_0(%arg0: i32, %arg1: i32) -> (i32, i32) {
    %c0_i32 = arith.constant 0 : i32
    %c0_i32_0 = arith.constant 0 : i32
    return %arg0, %c0_i32 : i32, i32
  }
  func.func @transform_1(%arg0: i32, %arg1: i32) -> (i32, i32) {
    %c0_i32 = arith.constant 0 : i32
    %c0_i32_0 = arith.constant 0 : i32
    %c0_i32_1 = arith.constant 0 : i32
    return %c0_i32, %c0_i32_0 : i32, i32
  }
  func.func @transform_2(%arg0: i32, %arg1: i32) -> (i32, i32) {
    %c0_i32 = arith.constant 0 : i32
    %c0_i32_0 = arith.constant 0 : i32
    return %c0_i32, %arg1 : i32, i32
  }
  func.func @transform_3(%arg0: i32, %arg1: i32) -> (i32, i32) {
    %c0_i32 = arith.constant 0 : i32
    %c0_i32_0 = arith.constant 0 : i32
    return %c0_i32, %arg1 : i32, i32
  }
  func.func @transform_4(%arg0: i32, %arg1: i32) -> (i32, i32) {
    %c0_i32 = arith.constant 0 : i32
    return %arg0, %arg1 : i32, i32
  }
}

</mosaic_0001>

<bundles_post_ra>
// kernel: prenorm_linear.1
= control target key start
LH: loop header
LB: loop body
LE: loop exit
PB: predicated region body
PF: predicated region fallthrough
CT: control target
= control target key end

     0   :  { %s503_s15 = smov 0   ;;  %s505_s16 = smov 0   ;;  %s600_s0 = inlined_call_operand.vmem [shape: f32[16,128], index: 0, kind: input, shape index: {}]   ;;  %s601_s1 = inlined_call_operand.vmem [shape: f32[2,128], index: 1, kind: input, shape index: {}]   ;;  %s602_s2 = inlined_call_operand.vmem [shape: f32[1,128], index: 2, kind: input, shape index: {}]   ;;  %s603_s3 = inlined_call_operand.vmem [shape: f32[128,128], index: 3, kind: input, shape index: {}]   ;;  %s604_s4 = inlined_call_operand.vmem [shape: f32[16,128], index: 4, kind: output, shape index: {}]  }
   0x1   :  { %s507_s17 = smov 0  }
   0x2 LB: > { %s26_s18 = sadd.s32 1, %s472_s16  ;;  %p420_p0 = scmp.ge.s32.totalorder %s476_s17, 1  ;;  %s476_s17 = sphi %s507_s17, %s14_s17   ;;  %s472_s16 = sphi %s505_s16, %s606_s16   ;;  %s468_s15 = sphi %s503_s15, %s605_s15  }
   0x3   : > { %p28_p1 = scmp.ge.s32.totalorder %s26_s18, 2  ;;  %p192_p2 = scmp.lt.s32.totalorder %s476_s17, 3 }
   0x5   : > { %s608_s18 = smov (%p28_p1, %s26_s18), 0  ;;  %p193_p3 = pnand %p420_p0, %p192_p2 }
   0x6   : > { %p226_p4 = scmp.lt.s32.totalorder (!%p193_p3), %s468_s15, 1 }
   0x7   : > { %196 = sbr.rel (%p193_p3) target bundleno = 413 (0x19d), region = 36 }
   0xc   : > { %s610_s15 = smov (!%p226_p4, %s468_s15), 1  ;;  %v289_v1 = vld [vmem:[%s603_s3 + $0x78] sm:$0xff]  ;;  %v288_v6 = vld [vmem:[%s603_s3 + $0x70] sm:$0xff]  ;;  %v287_v7 = vld [vmem:[%s603_s3 + $0x68] sm:$0xff] }
   0xd   : > { %s421_s19 = sshll.u32 %s610_s15, 3  ;;  %294 = vmatpush.msra.mxu0 %v289_v1  ;;  %v286_v8 = vld [vmem:[%s603_s3 + $0x60] sm:$0xff]  ;;  %v285_v9 = vld [vmem:[%s603_s3 + $0x58] sm:$0xff]  ;;  %v284_v10 = vld [vmem:[%s603_s3 + $0x50] sm:$0xff] }
   0xe   : > { %s229_s22 = scalar_lea.vmem %s600_s0, %s421_s19  ;;  %v283_v11 = vld [vmem:[%s603_s3 + $0x48] sm:$0xff]  ;;  %v282_v12 = vld [vmem:[%s603_s3 + $0x40] sm:$0xff]  ;;  %v281_v13 = vld [vmem:[%s603_s3 + $0x38] sm:$0xff]  ;;  %s243_s21 = scalar_lea.vmem %s604_s4, %s421_s19 }
   0xf   : > { %v244_v0 = vld [vmem:[%s229_s22] sm:$0xff]  ;;  %295 = vmatpush.msra.mxu0 %v288_v6  ;;  %v280_v14 = vld [vmem:[%s603_s3 + $0x30] sm:$0xff]  ;;  %v279_v15 = vld [vmem:[%s603_s3 + $0x28] sm:$0xff] }
  0x10   : > { %247 = vadd.xlane.f32.xlu0 %v244_v0  ;;  %v278_v16 = vld [vmem:[%s603_s3 + $0x20] sm:$0xff]  ;;  %v277_v17 = vld [vmem:[%s603_s3 + $0x18] sm:$0xff]  ;;  %v276_v18 = vld [vmem:[%s603_s3 + $0x10] sm:$0xff] }
  0x11   : > { %296 = vmatpush.msra.mxu0 %v287_v7  ;;  %v275_v19 = vld [vmem:[%s603_s3 + $0x8] sm:$0xff]  ;;  %v274_v20 = vld [vmem:[%s603_s3] sm:$0xff] }
  0x12   : > { %v449_v33 = vld [vmem:[%s601_s1] ss:$0 sm:$0xff]  ;;  %v450_v36 = vld [vmem:[%s601_s1 + $0x1] ss:$0 sm:$0xff] }
  0x13   : > { %297 = vmatpush.msra.mxu0 %v286_v8  ;;  %v451_v39 = vld [vmem:[%s602_s2] ss:$0 sm:$0xff] }
  0x15   : > { %298 = vmatpush.msra.mxu0 %v285_v9 }
  0x17   : > { %299 = vmatpush.msra.mxu0 %v284_v10 }
  0x19   : > { %300 = vmatpush.msra.mxu0 %v283_v11 }
  0x1b   : > { %301 = vmatpush.msra.mxu0 %v282_v12 }
  0x1d   : > { %302 = vmatpush.msra.mxu0 %v281_v13 }
  0x1f   : > { %303 = vmatpush.msra.mxu0 %v280_v14 }
  0x21   : > { %304 = vmatpush.msra.mxu0 %v279_v15 }
  0x23   : > { %305 = vmatpush.msra.mxu0 %v278_v16 }
  0x25   : > { %306 = vmatpush.msra.mxu0 %v277_v17 }
  0x27   : > { %307 = vmatpush.msra.mxu0 %v276_v18 }
  0x29   : > { %308 = vmatpush.msra.mxu0 %v275_v19 }
  0x2b   : > { %309 = vmatpush.msra.mxu0 %v274_v20 }
  0x83   : > { %v248_v2 = vpop.xlane.xlu0 %247 }
  0x84   : > { %v249_v3 = vmul.f32 0.03125, %v248_v2 }
  0x86   : > { %v250_v4 = vsub.f32 %v244_v0, %v249_v3  ;;  %v255_v21 = vmul.f32 %v249_v3, %v249_v3 }
  0x88   : > { %v251_v5 = vmul.f32 %v250_v4, %v250_v4  ;;  %v256_v23 = vmul.f32 3.0, %v255_v21 }
  0x8a   : > { %252 = vadd.xlane.f32.xlu0 %v251_v5 }
  0xfd   : > { %v253_v22 = vpop.xlane.xlu0 %252 }
  0xfe   : > { %v254_v24 = vmul.f32 0.03125, %v253_v22 }
 0x100   : > { %v257_v25 = vsub.f32 %v254_v24, %v256_v23 }
 0x102   : > { %v258_v26 = vadd.f32 1e-05, %v257_v25 }
 0x104   : > { %452 = vrsqrt.f32 %v258_v26  ;;  %vm265_vm1 = vweird.f32 %v258_v26 }
 0x10a   : > { %v453_v27 = vpop.eup %452 }
 0x10b   : > { %v260_v28 = vmul.f32 %v453_v27, %v258_v26  ;;  %vm266_vm0 = vweird.f32 %v453_v27 }
 0x10c   : > { %vm267_vm2 = vmor %vm265_vm1, %vm266_vm0 }
 0x10d   : > { %v261_v29 = vmul.f32 %v453_v27, %v260_v28 }
 0x10f   : > { %v262_v30 = vmul.f32 0.5, %v261_v29 }
 0x111   : > { %v263_v31 = vsub.f32 1.5, %v262_v30 }
 0x113   : > { %v264_v32 = vmul.f32 %v453_v27, %v263_v31 }
 0x115   : > { %v268_v34 = vsel %vm267_vm2, %v453_v27, %v264_v32 }
 0x116   : > { %v269_v35 = vmul.f32 %v268_v34, %v250_v4 }
 0x118   : > { %v271_v37 = vmul.f32 %v449_v33, %v269_v35 }
 0x11a   : > { %v273_v38 = vadd.f32 %v450_v36, %v271_v37 }
 0x11c   : > { %310 = vmatmul.f32.vlgmr.msra.gmra.mxu0 %v273_v38 }
 0x199   : > { %v311_v40 = vpop.f32.mrf.mxu0 }
 0x19a   : > { %v312_v41 = vadd.f32 %v451_v39, %v311_v40 }
 0x19c   : > { %314 = vst [vmem:[%s243_s21] sm:$0xff] %v312_v41 }
 0x19d PF: > { %s14_s17 = sadd.s32 1, %s476_s17   ;;  %s605_s15 = smov %s472_s16 }
 0x19e   : > { %p11_p5 = scmp.ge.s32.totalorder %s14_s17, 4   ;;  %s606_s16 = smov %s608_s18 }
 0x1a0   :  { %13 = sbr.rel (!%p11_p5) target bundleno = 2 (0x2), region = 72 }

</bundles_post_ra>
